<compile_context>
chip_gen: v6e
topology: v6e:2x2x1
jax: 0.10.0
libtpu: 0.0.40
codegen_flags: <defaults>
</compile_context>

<pallas_src>
import functools

import jax
import jax.numpy as jnp
from jax.experimental import pallas as pl
from jax.experimental.pallas import tpu as pltpu


def _round_up(n: int, m: int) -> int:
    return ((n + m - 1) // m) * m


def _ae_kernel(x_ref, w1_ref, b1_ref, w2_ref, b2_ref, o_ref):
    # Encoder: x @ W1 + b1, ReLU (f32 accumulation on the MXU).
    h = jnp.dot(x_ref[...], w1_ref[...], preferred_element_type=jnp.float32)
    h = jnp.maximum(h + b1_ref[...], 0.0)        # (bm, 512) + (1, 512) broadcast
    # Decoder: h @ W2 + b2.
    y = jnp.dot(h.astype(w2_ref.dtype), w2_ref[...],
                preferred_element_type=jnp.float32)
    o_ref[...] = (y + b2_ref[...]).astype(o_ref.dtype)


@functools.partial(jax.jit, static_argnames=("block_m", "compute_dtype"))
def autoencoder_b_forward(x, w1, b1, w2, b2, *, block_m=None, compute_dtype=None):
    """x: (..., input_dim); returns same shape in x's original dtype."""
    orig_shape = x.shape
    D = orig_shape[-1]
    H = w1.shape[1]  # 512
    out_dtype = x.dtype

    # nn.Linear semantics: operate on the last dim, flatten leading dims.
    x = x.reshape(-1, D)
    B = x.shape[0]

    # Optional bf16 inputs/weights (v6e/v7x): halves weight HBM bytes; dots
    # still accumulate in f32, biases and output stay f32.
    if compute_dtype is not None:
        x = x.astype(compute_dtype)
        w1 = w1.astype(compute_dtype)
        w2 = w2.astype(compute_dtype)
    b1 = b1.astype(jnp.float32)
    b2 = b2.astype(jnp.float32)

    # Tile choice: whole (padded) batch in one step for small B; 256-row tiles
    # for large B so the MXU is full and several 'parallel' grid steps exist.
    if block_m is None:
        block_m = min(_round_up(B, 8), 256)
    else:
        block_m = _round_up(block_m, 8)

    # Ragged batch: pad to a multiple of block_m instead of forcing tiny tiles.
    Bp = _round_up(B, block_m)
    if Bp != B:
        x = jnp.pad(x, ((0, Bp - B), (0, 0)))

    grid = (Bp // block_m,)

    # Weights/biases have constant index_maps -> single-buffer them so their
    # VMEM footprint is not doubled by the default double-buffering.
    resident = dict(pipeline_mode=pl.Buffered(buffer_count=1))

    # Rough VMEM budget: resident weights/biases (x1) + x/out tiles (x2 for
    # double-buffering) + hidden activation. Raise the scoped limit if needed.
    itemsize = jnp.dtype(x.dtype).itemsize
    vmem_bytes = (
        (D * H + H * D) * jnp.dtype(w1.dtype).itemsize          # W1, W2
        + (H + D) * 4                                            # b1, b2 (f32)
        + 2 * block_m * D * itemsize                             # x tiles
        + 2 * block_m * D * jnp.dtype(out_dtype).itemsize        # out tiles
        + block_m * H * 4                                        # hidden (f32)
    )
    vmem_limit = min(max(int(vmem_bytes * 1.5), 32 * 1024 * 1024),
                     100 * 1024 * 1024)

    # TODO(synk): for very large input_dim (>= ~4-8K), tile D instead of
    # keeping full (D,512)/(512,D) weights resident (decoder N axis 'parallel'
    # + encoder K-reduction with a VMEM accumulator).
    out = pl.pallas_call(
        _ae_kernel,
        out_shape=jax.ShapeDtypeStruct((Bp, D), out_dtype),
        grid_spec=pltpu.PrefetchScalarGridSpec(
            num_scalar_prefetch=0,
            grid=grid,
            in_specs=[
                pl.BlockSpec((block_m, D), lambda i: (i, 0)),            # x tile
                pl.BlockSpec((D, H), lambda i: (0, 0), **resident),      # W1
                pl.BlockSpec((1, H), lambda i: (0, 0), **resident),      # b1
                pl.BlockSpec((H, D), lambda i: (0, 0), **resident),      # W2
                pl.BlockSpec((1, D), lambda i: (0, 0), **resident),      # b2
            ],
            out_specs=pl.BlockSpec((block_m, D), lambda i: (i, 0)),
        ),
        compiler_params=pltpu.CompilerParams(
            dimension_semantics=("parallel",),
            vmem_limit_bytes=vmem_limit,
        ),
    )(x, w1, b1, w2, b2)

    if Bp != B:
        out = out[:B]
    return out.reshape(orig_shape)


def init_params(key, input_dim, hidden=512, dtype=jnp.float32):
    """Deterministic init mimicking nn.Linear default (U(-1/sqrt(fan_in), +))."""
    k1, k2, k3, k4 = jax.random.split(key, 4)
    bound1 = 1.0 / jnp.sqrt(input_dim)
    bound2 = 1.0 / jnp.sqrt(hidden)
    # Stored as (in, out) so the kernel does x @ W.
    w1 = jax.random.uniform(k1, (input_dim, hidden), dtype, -bound1, bound1)
    b1 = jax.random.uniform(k2, (1, hidden), dtype, -bound1, bound1)
    w2 = jax.random.uniform(k3, (hidden, input_dim), dtype, -bound2, bound2)
    b2 = jax.random.uniform(k4, (1, input_dim), dtype, -bound2, bound2)
    return w1, b1, w2, b2


if __name__ == "__main__":
    key = jax.random.PRNGKey(0)
    k_x, k_p = jax.random.split(key)

    B, INPUT_DIM = 16, 256  # small shapes consistent with Linear(input_dim, 512)
    x = jax.random.normal(k_x, (B, INPUT_DIM), dtype=jnp.float32)
    w1, b1, w2, b2 = init_params(k_p, INPUT_DIM)

    # Reference in plain JAX (same math as the PyTorch forward).
    ref = jnp.maximum(x @ w1 + b1, 0.0) @ w2 + b2

    # f32 path (default tiling: whole batch in one grid step).
    out = autoencoder_b_forward(x, w1, b1, w2, b2)
    out = jax.block_until_ready(out)
    assert out.shape == (B, INPUT_DIM)
    assert jnp.allclose(out, ref, atol=1e-5, rtol=1e-5)

    # bf16 weight/activation path (what you'd run on v6e/v7x); loose tolerance
    # since ReLU activations are rounded to bf16 before the second matmul.
    out_bf16 = autoencoder_b_forward(x, w1, b1, w2, b2,
                                     compute_dtype=jnp.bfloat16)
    out_bf16 = jax.block_until_ready(out_bf16)
    assert out_bf16.shape == (B, INPUT_DIM)
    assert jnp.allclose(out_bf16, ref, atol=1e-1, rtol=1e-1)

    # Ragged-batch path (B not a multiple of the tile) exercises the pad/slice.
    xr = x[:11]
    out_r = jax.block_until_ready(autoencoder_b_forward(xr, w1, b1, w2, b2))
    assert out_r.shape == (11, INPUT_DIM)
    assert jnp.allclose(out_r, ref[:11], atol=1e-5, rtol=1e-5)

    # >2-D input path (nn.Linear applies to the last dim).
    x3 = x.reshape(2, 8, INPUT_DIM)
    out3 = jax.block_until_ready(autoencoder_b_forward(x3, w1, b1, w2, b2))
    assert out3.shape == (2, 8, INPUT_DIM)
    assert jnp.allclose(out3.reshape(B, INPUT_DIM), ref, atol=1e-5, rtol=1e-5)

    print("KERNEL_OK")
</pallas_src>

<mosaic_0001>
module attributes {stable_mosaic.version = 11 : i64} {
  func.func @_ae_kernel(%arg0: i32, %arg1: memref<16x256xf32, #tpu.memory_space<vmem>>, %arg2: memref<256x512xf32, #tpu.memory_space<vmem>>, %arg3: memref<1x512xf32, #tpu.memory_space<vmem>>, %arg4: memref<512x256xf32, #tpu.memory_space<vmem>>, %arg5: memref<1x256xf32, #tpu.memory_space<vmem>>, %arg6: memref<16x256xf32, #tpu.memory_space<vmem>>) attributes {dimension_semantics = [#tpu.dimension_semantics<parallel>], iteration_bounds = array<i64: 1>, scalar_prefetch = 0 : i64, scratch_operands = 0 : i64, tpu.core_type = #tpu.core_type<tc>, window_params = [{transform_indices = @transform_0, window_bounds = array<i64: 16, 256>}, {pipeline_mode = #tpu.pipeline_mode<synchronous>, transform_indices = @transform_1, window_bounds = array<i64: 256, 512>}, {pipeline_mode = #tpu.pipeline_mode<synchronous>, transform_indices = @transform_2, window_bounds = array<i64: 1, 512>}, {pipeline_mode = #tpu.pipeline_mode<synchronous>, transform_indices = @transform_3, window_bounds = array<i64: 512, 256>}, {pipeline_mode = #tpu.pipeline_mode<synchronous>, transform_indices = @transform_4, window_bounds = array<i64: 1, 256>}, {transform_indices = @transform_5, window_bounds = array<i64: 16, 256>}]} {
    %c0 = arith.constant 0 : index
    %c0_0 = arith.constant 0 : index
    %0 = vector.load %arg1[%c0, %c0_0] : memref<16x256xf32, #tpu.memory_space<vmem>>, vector<16x256xf32>
    %c0_1 = arith.constant 0 : index
    %c0_2 = arith.constant 0 : index
    %1 = vector.load %arg2[%c0_1, %c0_2] : memref<256x512xf32, #tpu.memory_space<vmem>>, vector<256x512xf32>
    %cst = arith.constant dense<0.000000e+00> : vector<16x512xf32>
    %2 = tpu.matmul %0, %1, %cst {dimension_numbers = #tpu.dot_dimension_numbers<[1], [0], [0], [1], [0, 0, 1, 1], [], []>} : vector<16x256xf32>, vector<256x512xf32>, vector<16x512xf32> -> vector<16x512xf32>
    %c0_3 = arith.constant 0 : index
    %c0_4 = arith.constant 0 : index
    %3 = vector.load %arg3[%c0_3, %c0_4] : memref<1x512xf32, #tpu.memory_space<vmem>>, vector<1x512xf32>
    %4 = vector.broadcast %3 : vector<1x512xf32> to vector<16x512xf32>
    %5 = arith.addf %2, %4 : vector<16x512xf32>
    %cst_5 = arith.constant 0.000000e+00 : f32
    %6 = vector.broadcast %cst_5 : f32 to vector<16x512xf32>
    %7 = arith.maximumf %5, %6 : vector<16x512xf32>
    %c0_6 = arith.constant 0 : index
    %c0_7 = arith.constant 0 : index
    %8 = vector.load %arg4[%c0_6, %c0_7] : memref<512x256xf32, #tpu.memory_space<vmem>>, vector<512x256xf32>
    %cst_8 = arith.constant dense<0.000000e+00> : vector<16x256xf32>
    %9 = tpu.matmul %7, %8, %cst_8 {dimension_numbers = #tpu.dot_dimension_numbers<[1], [0], [0], [1], [0, 0, 1, 1], [], []>} : vector<16x512xf32>, vector<512x256xf32>, vector<16x256xf32> -> vector<16x256xf32>
    %c0_9 = arith.constant 0 : index
    %c0_10 = arith.constant 0 : index
    %10 = vector.load %arg5[%c0_9, %c0_10] : memref<1x256xf32, #tpu.memory_space<vmem>>, vector<1x256xf32>
    %11 = vector.broadcast %10 : vector<1x256xf32> to vector<16x256xf32>
    %12 = arith.addf %9, %11 : vector<16x256xf32>
    %c0_11 = arith.constant 0 : index
    %c0_12 = arith.constant 0 : index
    %13 = vector.load %arg6[%c0_11, %c0_12] : memref<16x256xf32, #tpu.memory_space<vmem>>, vector<16x256xf32>
    tpu.vector_store %arg6[%c0_11, %c0_12], %12 {strides = array<i32>} : memref<16x256xf32, #tpu.memory_space<vmem>>, vector<16x256xf32>,
    return
  }
  func.func @transform_0(%arg0: i32) -> (i32, i32) {
    %c0_i32 = arith.constant 0 : i32
    %c0_i32_0 = arith.constant 0 : i32
    return %arg0, %c0_i32 : i32, i32
  }
  func.func @transform_1(%arg0: i32) -> (i32, i32) {
    %c0_i32 = arith.constant 0 : i32
    %c0_i32_0 = arith.constant 0 : i32
    %c0_i32_1 = arith.constant 0 : i32
    return %c0_i32, %c0_i32_0 : i32, i32
  }
  func.func @transform_2(%arg0: i32) -> (i32, i32) {
    %c0_i32 = arith.constant 0 : i32
    %c0_i32_0 = arith.constant 0 : i32
    %c0_i32_1 = arith.constant 0 : i32
    return %c0_i32, %c0_i32_0 : i32, i32
  }
  func.func @transform_3(%arg0: i32) -> (i32, i32) {
    %c0_i32 = arith.constant 0 : i32
    %c0_i32_0 = arith.constant 0 : i32
    %c0_i32_1 = arith.constant 0 : i32
    return %c0_i32, %c0_i32_0 : i32, i32
  }
  func.func @transform_4(%arg0: i32) -> (i32, i32) {
    %c0_i32 = arith.constant 0 : i32
    %c0_i32_0 = arith.constant 0 : i32
    %c0_i32_1 = arith.constant 0 : i32
    return %c0_i32, %c0_i32_0 : i32, i32
  }
  func.func @transform_5(%arg0: i32) -> (i32, i32) {
    %c0_i32 = arith.constant 0 : i32
    %c0_i32_0 = arith.constant 0 : i32
    return %arg0, %c0_i32 : i32, i32
  }
}

</mosaic_0001>

<bundles_post_ra>
// kernel: autoencoder_b_forward.1
= control target key start
LH: loop header
LB: loop body
LE: loop exit
PB: predicated region body
PF: predicated region fallthrough
CT: control target
= control target key end

     0   :  { %10 = vsyncpa [#allocation3], 0  ;;  %s890_s0 = inlined_call_operand.hbm [shape: f32[16,256], index: 0, kind: input, shape index: {}]   ;;  %s891_s1 = inlined_call_operand.hbm [shape: f32[256,512], index: 1, kind: input, shape index: {}]   ;;  %s892_s2 = inlined_call_operand.hbm [shape: f32[1,512], index: 2, kind: input, shape index: {}]   ;;  %s893_s3 = inlined_call_operand.hbm [shape: f32[512,256], index: 3, kind: input, shape index: {}]   ;;  %s894_s4 = inlined_call_operand.vmem [shape: f32[1,256], index: 4, kind: input, shape index: {}]   ;;  %s895_s5 = inlined_call_operand.hbm [shape: f32[16,256], index: 5, kind: output, shape index: {}]  }
   0x1   :  { %11 = vsyncpa [#allocation6], 0 }
   0x2   :  { %12 = vsyncpa [#allocation9], 0 }
   0x3   :  { %13 = vsyncpa [#allocation4], 0  ;;  %s824_s18 = smov [#allocation5]  }
   0x4   :  { %s31_s19 = sshll.u32 %s824_s18, 4  ;;  %s32_s19 = int_to_ptr.vmem [resolvable:$true] %s31_s19 }
   0x5   :  { %s724_s20 = scalar_lea.vmem %s32_s19, 16384  ;;  %p729_p1 = scmp.lt.s32.totalorder %s32_s19, %s32_s19 }
   0x6   :  { %p725_p0 = scmp.ne.s32.totalorder %s32_s19, %s724_s20  ;;  %p730_p2 = scmp.lt.s32.totalorder %s724_s20, %s724_s20 }
   0x8   :  { %p731_p3 = por %p730_p2, %p729_p1 }
   0xa   :  { %p732_p4 = pnand %p731_p3, %p725_p0 }
   0xc   :  { %735 = shalt.err (!%p732_p4)
}
   0xd   :  { %s825_s21 = smov 512   ;;  %s826_s22 = smov 32  }
   0xe   :  { %37 = dma.hbm_to_vmem [thread:$0]  %s891_s1, 16384, %s32_s19, [#allocation6], %s825_s21, %s825_s21, %s826_s22  }
   0xf   :  { %s827_s25 = smov [#allocation2]  }
  0x10   :  { %s19_s26 = sshll.u32 %s827_s25, 4  ;;  %s20_s26 = int_to_ptr.vmem [resolvable:$true] %s19_s26 }
  0x11   :  { %s744_s27 = scalar_lea.vmem %s20_s26, 512  ;;  %p749_p6 = scmp.lt.s32.totalorder %s20_s26, %s20_s26 }
  0x12   :  { %p745_p5 = scmp.ne.s32.totalorder %s20_s26, %s744_s27  ;;  %p750_p7 = scmp.lt.s32.totalorder %s744_s27, %s744_s27 }
  0x14   :  { %p751_p8 = por %p750_p7, %p749_p6 }
  0x16   :  { %p752_p9 = pnand %p751_p8, %p745_p5 }
  0x18   :  { %755 = shalt.err (!%p752_p9)
}
  0x19   :  { %s828_s28 = smov 256   ;;  %s829_s29 = smov 16  }
  0x1a   :  { %25 = dma.hbm_to_vmem [thread:$0]  %s890_s0, 512, %s20_s26, [#allocation3], %s828_s28, %s828_s28, %s829_s29  }
  0x1b   :  { %s830_s1 = smov [#allocation7]   ;;  %s831_s8 = smov [#allocation8]  }
  0x1c   :  { %s44_s7 = sshll.u32 %s830_s1, 4  ;;  %s53_s9 = sshll.u32 %s831_s8, 4  ;;  %s45_s7 = int_to_ptr.vmem [resolvable:$true] %s44_s7  ;;  %s54_s9 = int_to_ptr.vmem [resolvable:$true] %s53_s9 }
  0x1d   :  { %s764_s10 = scalar_lea.vmem %s45_s7, 64  ;;  %p769_p11 = scmp.lt.s32.totalorder %s45_s7, %s45_s7 }
  0x1e   :  { %p765_p10 = scmp.ne.s32.totalorder %s45_s7, %s764_s10  ;;  %p770_p12 = scmp.lt.s32.totalorder %s764_s10, %s764_s10 }
  0x20   :  { %p771_p13 = por %p770_p12, %p769_p11 }
  0x22   :  { %p772_p0 = pnand %p771_p13, %p765_p10 }
  0x24   :  { %775 = shalt.err (!%p772_p0)
}
  0x25   :  { %47 = dma.hbm_to_vmem [thread:$0]  %s892_s2, 64, %s45_s7, [#allocation6]  }
  0x26   :  { %s784_s13 = scalar_lea.vmem %s54_s9, 16384  ;;  %p789_p2 = scmp.lt.s32.totalorder %s54_s9, %s54_s9 }
  0x27   :  { %p785_p1 = scmp.ne.s32.totalorder %s54_s9, %s784_s13  ;;  %p790_p3 = scmp.lt.s32.totalorder %s784_s13, %s784_s13 }
  0x29   :  { %p791_p4 = por %p790_p3, %p789_p2 }
  0x2b   :  { %p792_p5 = pnand %p791_p4, %p785_p1 }
  0x2d   :  { %795 = shalt.err (!%p792_p5)
}
  0x2e   :  { %59 = dma.hbm_to_vmem [thread:$0]  %s893_s3, 16384, %s54_s9, [#allocation9], %s828_s28, %s828_s28, %s829_s29  }
  0x2f   :  { %816 = dma.done.wait [#allocation3], 512  }
  0x30   :  { %817 = vsyncadd [#allocation3], 4294966784 }
  0x31   :  { %818 = dma.done.wait [#allocation6], 16448  }
  0x32   :  { %819 = vsyncadd [#allocation6], 4294950848 }
  0x33   :  { %820 = dma.done.wait [#allocation9], 16384  }
  0x34   :  { %821 = vsyncadd [#allocation9], 4294950912  ;;  %v139_v0 = vld [vmem:[#allocation5 + $0x1e8] sm:$0xff]  ;;  %v141_v1 = vld [vmem:[#allocation5 + $0x1f8] sm:$0xff]  ;;  %s832_s15 = smov [#allocation10]  }
  0x35   :  { %v138_v2 = vld [vmem:[#allocation5 + $0x1e0] sm:$0xff]  ;;  %228 = vmatprep.subr.mxu0 %v139_v0  ;;  %305 = vmatprep.subr.mxu1 %v141_v1  ;;  %v140_v3 = vld [vmem:[#allocation5 + $0x1f0] sm:$0xff]  ;;  %v135_v4 = vld [vmem:[#allocation5 + $0x1c8] sm:$0xff]  ;;  %s693_s16 = sshll.u32 %s832_s15, 4  ;;  %s694_s16 = int_to_ptr.vmem [resolvable:$true] %s693_s16 }
  0x36   :  { %v137_v5 = vld [vmem:[#allocation5 + $0x1d8] sm:$0xff]  ;;  %229 = vmatpush1.msra.mxu0 %v138_v2  ;;  %306 = vmatpush1.msra.mxu1 %v140_v3  ;;  %v134_v6 = vld [vmem:[#allocation5 + $0x1c0] sm:$0xff]  ;;  %v136_v7 = vld [vmem:[#allocation5 + $0x1d0] sm:$0xff]  ;;  %p801_p7 = scmp.lt.s32.totalorder %s694_s16, %s694_s16 }
  0x37   :  { %v131_v8 = vld [vmem:[#allocation5 + $0x1a8] sm:$0xff]  ;;  %230 = vmatprep.subr.mxu0 %v135_v4  ;;  %307 = vmatprep.subr.mxu1 %v137_v5  ;;  %v133_v9 = vld [vmem:[#allocation5 + $0x1b8] sm:$0xff]  ;;  %v130_v10 = vld [vmem:[#allocation5 + $0x1a0] sm:$0xff] }
  0x38   :  { %v132_v11 = vld [vmem:[#allocation5 + $0x1b0] sm:$0xff]  ;;  %231 = vmatpush1.msra.mxu0 %v134_v6  ;;  %308 = vmatpush1.msra.mxu1 %v136_v7  ;;  %v127_v12 = vld [vmem:[#allocation5 + $0x188] sm:$0xff]  ;;  %v129_v13 = vld [vmem:[#allocation5 + $0x198] sm:$0xff] }
  0x39   :  { %232 = vmatprep.subr.mxu0 %v131_v8  ;;  %309 = vmatprep.subr.mxu1 %v133_v9  ;;  %v126_v14 = vld [vmem:[#allocation5 + $0x180] sm:$0xff]  ;;  %v128_v15 = vld [vmem:[#allocation5 + $0x190] sm:$0xff]  ;;  %v123_v16 = vld [vmem:[#allocation5 + $0x168] sm:$0xff] }
  0x3a   :  { %233 = vmatpush1.msra.mxu0 %v130_v10  ;;  %310 = vmatpush1.msra.mxu1 %v132_v11  ;;  %v125_v17 = vld [vmem:[#allocation5 + $0x178] sm:$0xff]  ;;  %v122_v18 = vld [vmem:[#allocation5 + $0x160] sm:$0xff]  ;;  %v124_v19 = vld [vmem:[#allocation5 + $0x170] sm:$0xff] }
  0x3b   :  { %234 = vmatprep.subr.mxu0 %v127_v12  ;;  %311 = vmatprep.subr.mxu1 %v129_v13  ;;  %v119_v20 = vld [vmem:[#allocation5 + $0x148] sm:$0xff]  ;;  %v121_v21 = vld [vmem:[#allocation5 + $0x158] sm:$0xff]  ;;  %v118_v22 = vld [vmem:[#allocation5 + $0x140] sm:$0xff] }
  0x3c   :  { %235 = vmatpush1.msra.mxu0 %v126_v14  ;;  %312 = vmatpush1.msra.mxu1 %v128_v15  ;;  %v120_v23 = vld [vmem:[#allocation5 + $0x150] sm:$0xff]  ;;  %v115_v24 = vld [vmem:[#allocation5 + $0x128] sm:$0xff]  ;;  %v117_v25 = vld [vmem:[#allocation5 + $0x138] sm:$0xff] }
  0x3d   :  { %236 = vmatprep.subr.mxu0 %v123_v16  ;;  %313 = vmatprep.subr.mxu1 %v125_v17  ;;  %v114_v26 = vld [vmem:[#allocation5 + $0x120] sm:$0xff]  ;;  %v116_v27 = vld [vmem:[#allocation5 + $0x130] sm:$0xff]  ;;  %v111_v28 = vld [vmem:[#allocation5 + $0x108] sm:$0xff] }
  0x3e   :  { %237 = vmatpush1.msra.mxu0 %v122_v18  ;;  %314 = vmatpush1.msra.mxu1 %v124_v19  ;;  %v113_v29 = vld [vmem:[#allocation5 + $0x118] sm:$0xff]  ;;  %v110_v30 = vld [vmem:[#allocation5 + $0x100] sm:$0xff]  ;;  %v112_v31 = vld [vmem:[#allocation5 + $0x110] sm:$0xff] }
  0x3f   :  { %238 = vmatprep.subr.mxu0 %v119_v20  ;;  %315 = vmatprep.subr.mxu1 %v121_v21  ;;  %v107_v32 = vld [vmem:[#allocation5 + $0xe8] sm:$0xff]  ;;  %v109_v33 = vld [vmem:[#allocation5 + $0xf8] sm:$0xff]  ;;  %v106_v34 = vld [vmem:[#allocation5 + $0xe0] sm:$0xff] }
  0x40   :  { %239 = vmatpush1.msra.mxu0 %v118_v22  ;;  %316 = vmatpush1.msra.mxu1 %v120_v23  ;;  %v108_v35 = vld [vmem:[#allocation5 + $0xf0] sm:$0xff]  ;;  %v103_v36 = vld [vmem:[#allocation5 + $0xc8] sm:$0xff]  ;;  %v105_v37 = vld [vmem:[#allocation5 + $0xd8] sm:$0xff] }
  0x41   :  { %240 = vmatprep.subr.mxu0 %v115_v24  ;;  %317 = vmatprep.subr.mxu1 %v117_v25  ;;  %v102_v38 = vld [vmem:[#allocation5 + $0xc0] sm:$0xff]  ;;  %v104_v39 = vld [vmem:[#allocation5 + $0xd0] sm:$0xff]  ;;  %v99_v40 = vld [vmem:[#allocation5 + $0xa8] sm:$0xff] }
  0x42   :  { %241 = vmatpush1.msra.mxu0 %v114_v26  ;;  %318 = vmatpush1.msra.mxu1 %v116_v27  ;;  %v101_v41 = vld [vmem:[#allocation5 + $0xb8] sm:$0xff]  ;;  %v98_v42 = vld [vmem:[#allocation5 + $0xa0] sm:$0xff]  ;;  %v100_v43 = vld [vmem:[#allocation5 + $0xb0] sm:$0xff] }
  0x43   :  { %242 = vmatprep.subr.mxu0 %v111_v28  ;;  %319 = vmatprep.subr.mxu1 %v113_v29  ;;  %v95_v44 = vld [vmem:[#allocation5 + $0x88] sm:$0xff]  ;;  %v97_v45 = vld [vmem:[#allocation5 + $0x98] sm:$0xff]  ;;  %v94_v46 = vld [vmem:[#allocation5 + $0x80] sm:$0xff] }
  0x44   :  { %243 = vmatpush1.msra.mxu0 %v110_v30  ;;  %320 = vmatpush1.msra.mxu1 %v112_v31  ;;  %v96_v47 = vld [vmem:[#allocation5 + $0x90] sm:$0xff]  ;;  %v91_v48 = vld [vmem:[#allocation5 + $0x68] sm:$0xff]  ;;  %v93_v49 = vld [vmem:[#allocation5 + $0x78] sm:$0xff] }
  0x45   :  { %244 = vmatprep.subr.mxu0 %v107_v32  ;;  %321 = vmatprep.subr.mxu1 %v109_v33  ;;  %v90_v50 = vld [vmem:[#allocation5 + $0x60] sm:$0xff]  ;;  %v92_v51 = vld [vmem:[#allocation5 + $0x70] sm:$0xff]  ;;  %v87_v52 = vld [vmem:[#allocation5 + $0x48] sm:$0xff] }
  0x46   :  { %245 = vmatpush1.msra.mxu0 %v106_v34  ;;  %322 = vmatpush1.msra.mxu1 %v108_v35  ;;  %v89_v53 = vld [vmem:[#allocation5 + $0x58] sm:$0xff]  ;;  %v86_v54 = vld [vmem:[#allocation5 + $0x40] sm:$0xff]  ;;  %v88_v55 = vld [vmem:[#allocation5 + $0x50] sm:$0xff] }
  0x47   :  { %246 = vmatprep.subr.mxu0 %v103_v36  ;;  %323 = vmatprep.subr.mxu1 %v105_v37  ;;  %v83_v56 = vld [vmem:[#allocation5 + $0x28] sm:$0xff]  ;;  %v85_v57 = vld [vmem:[#allocation5 + $0x38] sm:$0xff]  ;;  %v82_v58 = vld [vmem:[#allocation5 + $0x20] sm:$0xff] }
  0x48   :  { %247 = vmatpush1.msra.mxu0 %v102_v38  ;;  %324 = vmatpush1.msra.mxu1 %v104_v39  ;;  %v84_v59 = vld [vmem:[#allocation5 + $0x30] sm:$0xff]  ;;  %v79_v60 = vld [vmem:[#allocation5 + $0x8] sm:$0xff]  ;;  %v81_v61 = vld [vmem:[#allocation5 + $0x18] sm:$0xff] }
  0x49   :  { %248 = vmatprep.subr.mxu0 %v99_v40  ;;  %325 = vmatprep.subr.mxu1 %v101_v41  ;;  %v78_v62 = vld [vmem:[#allocation5] sm:$0xff]  ;;  %v80_v63 = vld [vmem:[#allocation5 + $0x10] sm:$0xff]  ;;  %v203_v0 = vld [vmem:[#allocation5 + $0x3e8] sm:$0xff] }
  0x4a   :  { %249 = vmatpush1.msra.mxu0 %v98_v42  ;;  %326 = vmatpush1.msra.mxu1 %v100_v43  ;;  %v205_v1 = vld [vmem:[#allocation5 + $0x3f8] sm:$0xff]  ;;  %v202_v2 = vld [vmem:[#allocation5 + $0x3e0] sm:$0xff]  ;;  %v204_v3 = vld [vmem:[#allocation5 + $0x3f0] sm:$0xff] }
  0x4b   :  { %250 = vmatprep.subr.mxu0 %v95_v44  ;;  %327 = vmatprep.subr.mxu1 %v97_v45  ;;  %v199_v4 = vld [vmem:[#allocation5 + $0x3c8] sm:$0xff]  ;;  %v201_v5 = vld [vmem:[#allocation5 + $0x3d8] sm:$0xff]  ;;  %v198_v6 = vld [vmem:[#allocation5 + $0x3c0] sm:$0xff] }
  0x4c   :  { %251 = vmatpush1.msra.mxu0 %v94_v46  ;;  %328 = vmatpush1.msra.mxu1 %v96_v47  ;;  %v200_v7 = vld [vmem:[#allocation5 + $0x3d0] sm:$0xff]  ;;  %v195_v8 = vld [vmem:[#allocation5 + $0x3a8] sm:$0xff]  ;;  %v197_v9 = vld [vmem:[#allocation5 + $0x3b8] sm:$0xff] }
  0x4d   :  { %252 = vmatprep.subr.mxu0 %v91_v48  ;;  %329 = vmatprep.subr.mxu1 %v93_v49  ;;  %v194_v10 = vld [vmem:[#allocation5 + $0x3a0] sm:$0xff]  ;;  %v196_v11 = vld [vmem:[#allocation5 + $0x3b0] sm:$0xff]  ;;  %v191_v12 = vld [vmem:[#allocation5 + $0x388] sm:$0xff] }
  0x4e   :  { %253 = vmatpush1.msra.mxu0 %v90_v50  ;;  %330 = vmatpush1.msra.mxu1 %v92_v51  ;;  %v193_v13 = vld [vmem:[#allocation5 + $0x398] sm:$0xff]  ;;  %v190_v14 = vld [vmem:[#allocation5 + $0x380] sm:$0xff]  ;;  %v192_v15 = vld [vmem:[#allocation5 + $0x390] sm:$0xff] }
  0x4f   :  { %254 = vmatprep.subr.mxu0 %v87_v52  ;;  %331 = vmatprep.subr.mxu1 %v89_v53  ;;  %v187_v16 = vld [vmem:[#allocation5 + $0x368] sm:$0xff]  ;;  %v189_v17 = vld [vmem:[#allocation5 + $0x378] sm:$0xff]  ;;  %v186_v18 = vld [vmem:[#allocation5 + $0x360] sm:$0xff] }
  0x50   :  { %255 = vmatpush1.msra.mxu0 %v86_v54  ;;  %332 = vmatpush1.msra.mxu1 %v88_v55  ;;  %v188_v19 = vld [vmem:[#allocation5 + $0x370] sm:$0xff]  ;;  %v183_v20 = vld [vmem:[#allocation5 + $0x348] sm:$0xff]  ;;  %v185_v21 = vld [vmem:[#allocation5 + $0x358] sm:$0xff] }
  0x51   :  { %256 = vmatprep.subr.mxu0 %v83_v56  ;;  %333 = vmatprep.subr.mxu1 %v85_v57  ;;  %v182_v22 = vld [vmem:[#allocation5 + $0x340] sm:$0xff]  ;;  %v184_v23 = vld [vmem:[#allocation5 + $0x350] sm:$0xff]  ;;  %v179_v24 = vld [vmem:[#allocation5 + $0x328] sm:$0xff] }
  0x52   :  { %257 = vmatpush1.msra.mxu0 %v82_v58  ;;  %334 = vmatpush1.msra.mxu1 %v84_v59  ;;  %v181_v25 = vld [vmem:[#allocation5 + $0x338] sm:$0xff]  ;;  %v178_v26 = vld [vmem:[#allocation5 + $0x320] sm:$0xff]  ;;  %v180_v27 = vld [vmem:[#allocation5 + $0x330] sm:$0xff] }
  0x53   :  { %258 = vmatprep.subr.mxu0 %v79_v60  ;;  %335 = vmatprep.subr.mxu1 %v81_v61  ;;  %v175_v28 = vld [vmem:[#allocation5 + $0x308] sm:$0xff]  ;;  %v177_v29 = vld [vmem:[#allocation5 + $0x318] sm:$0xff]  ;;  %v174_v30 = vld [vmem:[#allocation5 + $0x300] sm:$0xff] }
  0x54   :  { %259 = vmatpush1.msra.mxu0 %v78_v62  ;;  %336 = vmatpush1.msra.mxu1 %v80_v63  ;;  %v176_v31 = vld [vmem:[#allocation5 + $0x310] sm:$0xff]  ;;  %v171_v32 = vld [vmem:[#allocation5 + $0x2e8] sm:$0xff]  ;;  %v173_v33 = vld [vmem:[#allocation5 + $0x2f8] sm:$0xff] }
  0x55   :  { %260 = vmatprep.subr.mxu0 %v203_v0  ;;  %337 = vmatprep.subr.mxu1 %v205_v1  ;;  %v170_v34 = vld [vmem:[#allocation5 + $0x2e0] sm:$0xff]  ;;  %v172_v35 = vld [vmem:[#allocation5 + $0x2f0] sm:$0xff]  ;;  %v167_v36 = vld [vmem:[#allocation5 + $0x2c8] sm:$0xff] }
  0x56   :  { %261 = vmatpush2.msra.mxu0 %v202_v2  ;;  %338 = vmatpush2.msra.mxu1 %v204_v3  ;;  %v169_v37 = vld [vmem:[#allocation5 + $0x2d8] sm:$0xff]  ;;  %v166_v38 = vld [vmem:[#allocation5 + $0x2c0] sm:$0xff]  ;;  %v168_v39 = vld [vmem:[#allocation5 + $0x2d0] sm:$0xff] }
  0x57   :  { %262 = vmatprep.subr.mxu0 %v199_v4  ;;  %339 = vmatprep.subr.mxu1 %v201_v5  ;;  %v163_v40 = vld [vmem:[#allocation5 + $0x2a8] sm:$0xff]  ;;  %v165_v41 = vld [vmem:[#allocation5 + $0x2b8] sm:$0xff]  ;;  %v162_v42 = vld [vmem:[#allocation5 + $0x2a0] sm:$0xff] }
  0x58   :  { %263 = vmatpush2.msra.mxu0 %v198_v6  ;;  %340 = vmatpush2.msra.mxu1 %v200_v7  ;;  %v164_v43 = vld [vmem:[#allocation5 + $0x2b0] sm:$0xff]  ;;  %v159_v44 = vld [vmem:[#allocation5 + $0x288] sm:$0xff]  ;;  %v161_v45 = vld [vmem:[#allocation5 + $0x298] sm:$0xff] }
  0x59   :  { %264 = vmatprep.subr.mxu0 %v195_v8  ;;  %341 = vmatprep.subr.mxu1 %v197_v9  ;;  %v158_v46 = vld [vmem:[#allocation5 + $0x280] sm:$0xff]  ;;  %v160_v47 = vld [vmem:[#allocation5 + $0x290] sm:$0xff]  ;;  %v155_v48 = vld [vmem:[#allocation5 + $0x268] sm:$0xff] }
  0x5a   :  { %265 = vmatpush2.msra.mxu0 %v194_v10  ;;  %342 = vmatpush2.msra.mxu1 %v196_v11  ;;  %v157_v49 = vld [vmem:[#allocation5 + $0x278] sm:$0xff]  ;;  %v154_v50 = vld [vmem:[#allocation5 + $0x260] sm:$0xff]  ;;  %v156_v51 = vld [vmem:[#allocation5 + $0x270] sm:$0xff] }
  0x5b   :  { %266 = vmatprep.subr.mxu0 %v191_v12  ;;  %343 = vmatprep.subr.mxu1 %v193_v13  ;;  %v151_v52 = vld [vmem:[#allocation5 + $0x248] sm:$0xff]  ;;  %v153_v53 = vld [vmem:[#allocation5 + $0x258] sm:$0xff]  ;;  %v150_v54 = vld [vmem:[#allocation5 + $0x240] sm:$0xff] }
  0x5c   :  { %267 = vmatpush2.msra.mxu0 %v190_v14  ;;  %344 = vmatpush2.msra.mxu1 %v192_v15  ;;  %v152_v55 = vld [vmem:[#allocation5 + $0x250] sm:$0xff]  ;;  %v147_v56 = vld [vmem:[#allocation5 + $0x228] sm:$0xff]  ;;  %v149_v57 = vld [vmem:[#allocation5 + $0x238] sm:$0xff] }
  0x5d   :  { %268 = vmatprep.subr.mxu0 %v187_v16  ;;  %345 = vmatprep.subr.mxu1 %v189_v17  ;;  %v146_v58 = vld [vmem:[#allocation5 + $0x220] sm:$0xff]  ;;  %v148_v59 = vld [vmem:[#allocation5 + $0x230] sm:$0xff]  ;;  %v143_v60 = vld [vmem:[#allocation5 + $0x208] sm:$0xff] }
  0x5e   :  { %269 = vmatpush2.msra.mxu0 %v186_v18  ;;  %346 = vmatpush2.msra.mxu1 %v188_v19  ;;  %v145_v61 = vld [vmem:[#allocation5 + $0x218] sm:$0xff]  ;;  %v142_v62 = vld [vmem:[#allocation5 + $0x200] sm:$0xff]  ;;  %v75_v63 = vld [vmem:[#allocation2 + $0x8] sm:$0xff] }
  0x5f   :  { %270 = vmatprep.subr.mxu0 %v183_v20  ;;  %347 = vmatprep.subr.mxu1 %v185_v21  ;;  %v144_v0 = vld [vmem:[#allocation5 + $0x210] sm:$0xff]  ;;  %v74_v1 = vld [vmem:[#allocation2] sm:$0xff]  ;;  %v77_v2 = vld [vmem:[#allocation2 + $0x18] sm:$0xff] }
  0x60   :  { %271 = vmatpush2.msra.mxu0 %v182_v22  ;;  %348 = vmatpush2.msra.mxu1 %v184_v23  ;;  %v421_v3 = vld [vmem:[#allocation8 + $0xf8] sm:$0xff]  ;;  %v420_v5 = vld [vmem:[#allocation8 + $0xf0] sm:$0xff]  ;;  %v419_v8 = vld [vmem:[#allocation8 + $0xe8] sm:$0xff] }
  0x61   :  { %272 = vmatprep.subr.mxu0 %v179_v24  ;;  %349 = vmatprep.subr.mxu1 %v181_v25  ;;  %v485_v4 = vld [vmem:[#allocation8 + $0x2f8] sm:$0xff]  ;;  %v484_v6 = vld [vmem:[#allocation8 + $0x2f0] sm:$0xff]  ;;  %v483_v9 = vld [vmem:[#allocation8 + $0x2e8] sm:$0xff] }
  0x62   :  { %273 = vmatpush2.msra.mxu0 %v178_v26  ;;  %350 = vmatpush2.msra.mxu1 %v180_v27  ;;  %v76_v7 = vld [vmem:[#allocation2 + $0x10] sm:$0xff]  ;;  %v418_v10 = vld [vmem:[#allocation8 + $0xe0] sm:$0xff]  ;;  %v417_v12 = vld [vmem:[#allocation8 + $0xd8] sm:$0xff] }
  0x63   :  { %274 = vmatprep.subr.mxu0 %v175_v28  ;;  %351 = vmatprep.subr.mxu1 %v177_v29  ;;  %v482_v11 = vld [vmem:[#allocation8 + $0x2e0] sm:$0xff]  ;;  %v481_v13 = vld [vmem:[#allocation8 + $0x2d8] sm:$0xff]  ;;  %v416_v14 = vld [vmem:[#allocation8 + $0xd0] sm:$0xff] }
  0x64   :  { %275 = vmatpush2.msra.mxu0 %v174_v30  ;;  %352 = vmatpush2.msra.mxu1 %v176_v31  ;;  %v480_v15 = vld [vmem:[#allocation8 + $0x2d0] sm:$0xff]  ;;  %v415_v16 = vld [vmem:[#allocation8 + $0xc8] sm:$0xff]  ;;  %v414_v18 = vld [vmem:[#allocation8 + $0xc0] sm:$0xff] }
  0x65   :  { %276 = vmatprep.subr.mxu0 %v171_v32  ;;  %353 = vmatprep.subr.mxu1 %v173_v33  ;;  %v479_v17 = vld [vmem:[#allocation8 + $0x2c8] sm:$0xff]  ;;  %v478_v19 = vld [vmem:[#allocation8 + $0x2c0] sm:$0xff]  ;;  %v413_v20 = vld [vmem:[#allocation8 + $0xb8] sm:$0xff] }
  0x66   :  { %277 = vmatpush2.msra.mxu0 %v170_v34  ;;  %354 = vmatpush2.msra.mxu1 %v172_v35  ;;  %v477_v21 = vld [vmem:[#allocation8 + $0x2b8] sm:$0xff]  ;;  %v412_v22 = vld [vmem:[#allocation8 + $0xb0] sm:$0xff]  ;;  %v411_v24 = vld [vmem:[#allocation8 + $0xa8] sm:$0xff] }
  0x67   :  { %278 = vmatprep.subr.mxu0 %v167_v36  ;;  %355 = vmatprep.subr.mxu1 %v169_v37  ;;  %v476_v23 = vld [vmem:[#allocation8 + $0x2b0] sm:$0xff]  ;;  %v475_v25 = vld [vmem:[#allocation8 + $0x2a8] sm:$0xff]  ;;  %v410_v26 = vld [vmem:[#allocation8 + $0xa0] sm:$0xff] }
  0x68   :  { %279 = vmatpush2.msra.mxu0 %v166_v38  ;;  %356 = vmatpush2.msra.mxu1 %v168_v39  ;;  %v474_v27 = vld [vmem:[#allocation8 + $0x2a0] sm:$0xff]  ;;  %v409_v28 = vld [vmem:[#allocation8 + $0x98] sm:$0xff]  ;;  %v408_v30 = vld [vmem:[#allocation8 + $0x90] sm:$0xff] }
  0x69   :  { %280 = vmatprep.subr.mxu0 %v163_v40  ;;  %357 = vmatprep.subr.mxu1 %v165_v41  ;;  %v473_v29 = vld [vmem:[#allocation8 + $0x298] sm:$0xff]  ;;  %v472_v31 = vld [vmem:[#allocation8 + $0x290] sm:$0xff]  ;;  %v407_v32 = vld [vmem:[#allocation8 + $0x88] sm:$0xff] }
  0x6a   :  { %281 = vmatpush2.msra.mxu0 %v162_v42  ;;  %358 = vmatpush2.msra.mxu1 %v164_v43  ;;  %v471_v33 = vld [vmem:[#allocation8 + $0x288] sm:$0xff]  ;;  %v406_v34 = vld [vmem:[#allocation8 + $0x80] sm:$0xff]  ;;  %v405_v36 = vld [vmem:[#allocation8 + $0x78] sm:$0xff] }
  0x6b   :  { %282 = vmatprep.subr.mxu0 %v159_v44  ;;  %359 = vmatprep.subr.mxu1 %v161_v45  ;;  %v470_v35 = vld [vmem:[#allocation8 + $0x280] sm:$0xff]  ;;  %v469_v37 = vld [vmem:[#allocation8 + $0x278] sm:$0xff]  ;;  %v404_v38 = vld [vmem:[#allocation8 + $0x70] sm:$0xff] }
  0x6c   :  { %283 = vmatpush2.msra.mxu0 %v158_v46  ;;  %360 = vmatpush2.msra.mxu1 %v160_v47  ;;  %v468_v39 = vld [vmem:[#allocation8 + $0x270] sm:$0xff]  ;;  %v403_v40 = vld [vmem:[#allocation8 + $0x68] sm:$0xff]  ;;  %v402_v42 = vld [vmem:[#allocation8 + $0x60] sm:$0xff] }
  0x6d   :  { %284 = vmatprep.subr.mxu0 %v155_v48  ;;  %361 = vmatprep.subr.mxu1 %v157_v49  ;;  %v467_v41 = vld [vmem:[#allocation8 + $0x268] sm:$0xff]  ;;  %v466_v43 = vld [vmem:[#allocation8 + $0x260] sm:$0xff]  ;;  %v401_v44 = vld [vmem:[#allocation8 + $0x58] sm:$0xff] }
  0x6e   :  { %285 = vmatpush2.msra.mxu0 %v154_v50  ;;  %362 = vmatpush2.msra.mxu1 %v156_v51  ;;  %v465_v45 = vld [vmem:[#allocation8 + $0x258] sm:$0xff]  ;;  %v400_v46 = vld [vmem:[#allocation8 + $0x50] sm:$0xff]  ;;  %v399_v48 = vld [vmem:[#allocation8 + $0x48] sm:$0xff] }
  0x6f   :  { %286 = vmatprep.subr.mxu0 %v151_v52  ;;  %363 = vmatprep.subr.mxu1 %v153_v53  ;;  %v464_v47 = vld [vmem:[#allocation8 + $0x250] sm:$0xff]  ;;  %v463_v49 = vld [vmem:[#allocation8 + $0x248] sm:$0xff]  ;;  %v398_v50 = vld [vmem:[#allocation8 + $0x40] sm:$0xff] }
  0x70   :  { %287 = vmatpush2.msra.mxu0 %v150_v54  ;;  %364 = vmatpush2.msra.mxu1 %v152_v55  ;;  %v462_v51 = vld [vmem:[#allocation8 + $0x240] sm:$0xff]  ;;  %v397_v52 = vld [vmem:[#allocation8 + $0x38] sm:$0xff]  ;;  %v396_v54 = vld [vmem:[#allocation8 + $0x30] sm:$0xff] }
  0x71   :  { %288 = vmatprep.subr.mxu0 %v147_v56  ;;  %365 = vmatprep.subr.mxu1 %v149_v57  ;;  %v461_v53 = vld [vmem:[#allocation8 + $0x238] sm:$0xff]  ;;  %v460_v55 = vld [vmem:[#allocation8 + $0x230] sm:$0xff]  ;;  %v395_v56 = vld [vmem:[#allocation8 + $0x28] sm:$0xff] }
  0x72   :  { %289 = vmatpush2.msra.mxu0 %v146_v58  ;;  %366 = vmatpush2.msra.mxu1 %v148_v59  ;;  %v459_v57 = vld [vmem:[#allocation8 + $0x228] sm:$0xff]  ;;  %v394_v58 = vld [vmem:[#allocation8 + $0x20] sm:$0xff] }
  0x73   :  { %290 = vmatprep.subr.mxu0 %v143_v60  ;;  %367 = vmatprep.subr.mxu1 %v145_v61  ;;  %v458_v59 = vld [vmem:[#allocation8 + $0x220] sm:$0xff]  ;;  %v393_v60 = vld [vmem:[#allocation8 + $0x18] sm:$0xff] }
  0x74   :  { %291 = vmatpush2.msra.mxu0 %v142_v62  ;;  %292 = vmatprep.mubr.f32.mxu0 %v75_v63  ;;  %v457_v61 = vld [vmem:[#allocation8 + $0x218] sm:$0xff]  ;;  %v392_v62 = vld [vmem:[#allocation8 + $0x10] sm:$0xff] }
  0x75   :  { %368 = vmatpush2.msra.mxu1 %v144_v0  ;;  %369 = vmatprep.mubr.f32.mxu1 %v75_v63  ;;  %v456_v63 = vld [vmem:[#allocation8 + $0x210] sm:$0xff]  ;;  %v391_v0 = vld [vmem:[#allocation8 + $0x8] sm:$0xff] }
  0x76   :  { %293 = vmatmul.mubr.f32.vlgmr.msra.gmra.mxu0 %v74_v1  ;;  %370 = vmatmul.mubr.f32.vlgmr.msra.gmra.mxu1 %v74_v1  ;;  %v455_v1 = vld [vmem:[#allocation8 + $0x208] sm:$0xff] }
  0x77   :  { %298 = vmatprep.mubr.f32.mxu0 %v77_v2  ;;  %375 = vmatprep.mubr.f32.mxu1 %v77_v2  ;;  %v390_v2 = vld [vmem:[#allocation8] sm:$0xff] }
  0x78   :  { %530 = vmatprep.subr.mxu0 %v421_v3  ;;  %607 = vmatprep.subr.mxu1 %v485_v4  ;;  %v454_v3 = vld [vmem:[#allocation8 + $0x200] sm:$0xff]  ;;  %v453_v4 = vld [vmem:[#allocation8 + $0x1f8] sm:$0xff] }
  0x79   :  { %531 = vmatpush1.msra.mxu0 %v420_v5  ;;  %608 = vmatpush1.msra.mxu1 %v484_v6  ;;  %v517_v5 = vld [vmem:[#allocation8 + $0x3f8] sm:$0xff]  ;;  %v452_v6 = vld [vmem:[#allocation8 + $0x1f0] sm:$0xff] }
  0x7a   :  { %299 = vmatmul.mubr.f32.gmra.mxu0 %v76_v7  ;;  %376 = vmatmul.mubr.f32.gmra.mxu1 %v76_v7  ;;  %v516_v7 = vld [vmem:[#allocation8 + $0x3f0] sm:$0xff] }
  0x7b   :  { %532 = vmatprep.subr.mxu0 %v419_v8  ;;  %609 = vmatprep.subr.mxu1 %v483_v9  ;;  %v451_v8 = vld [vmem:[#allocation8 + $0x1e8] sm:$0xff] }
  0x7c   :  { %533 = vmatpush1.msra.mxu0 %v418_v10  ;;  %610 = vmatpush1.msra.mxu1 %v482_v11  ;;  %v515_v9 = vld [vmem:[#allocation8 + $0x3e8] sm:$0xff]  ;;  %v450_v10 = vld [vmem:[#allocation8 + $0x1e0] sm:$0xff] }
  0x7d   :  { %534 = vmatprep.subr.mxu0 %v417_v12  ;;  %611 = vmatprep.subr.mxu1 %v481_v13  ;;  %v514_v11 = vld [vmem:[#allocation8 + $0x3e0] sm:$0xff]  ;;  %v449_v12 = vld [vmem:[#allocation8 + $0x1d8] sm:$0xff] }
  0x7e   :  { %535 = vmatpush1.msra.mxu0 %v416_v14  ;;  %612 = vmatpush1.msra.mxu1 %v480_v15  ;;  %v513_v13 = vld [vmem:[#allocation8 + $0x3d8] sm:$0xff]  ;;  %v448_v14 = vld [vmem:[#allocation8 + $0x1d0] sm:$0xff] }
  0x7f   :  { %536 = vmatprep.subr.mxu0 %v415_v16  ;;  %613 = vmatprep.subr.mxu1 %v479_v17  ;;  %v512_v15 = vld [vmem:[#allocation8 + $0x3d0] sm:$0xff]  ;;  %v447_v16 = vld [vmem:[#allocation8 + $0x1c8] sm:$0xff] }
  0x80   :  { %537 = vmatpush1.msra.mxu0 %v414_v18  ;;  %614 = vmatpush1.msra.mxu1 %v478_v19  ;;  %v511_v17 = vld [vmem:[#allocation8 + $0x3c8] sm:$0xff]  ;;  %v446_v18 = vld [vmem:[#allocation8 + $0x1c0] sm:$0xff] }
  0x81   :  { %538 = vmatprep.subr.mxu0 %v413_v20  ;;  %615 = vmatprep.subr.mxu1 %v477_v21  ;;  %v510_v19 = vld [vmem:[#allocation8 + $0x3c0] sm:$0xff]  ;;  %v445_v20 = vld [vmem:[#allocation8 + $0x1b8] sm:$0xff] }
  0x82   :  { %539 = vmatpush1.msra.mxu0 %v412_v22  ;;  %616 = vmatpush1.msra.mxu1 %v476_v23  ;;  %v509_v21 = vld [vmem:[#allocation8 + $0x3b8] sm:$0xff]  ;;  %v444_v22 = vld [vmem:[#allocation8 + $0x1b0] sm:$0xff] }
  0x83   :  { %540 = vmatprep.subr.mxu0 %v411_v24  ;;  %617 = vmatprep.subr.mxu1 %v475_v25  ;;  %v508_v23 = vld [vmem:[#allocation8 + $0x3b0] sm:$0xff]  ;;  %v443_v24 = vld [vmem:[#allocation8 + $0x1a8] sm:$0xff] }
  0x84   :  { %541 = vmatpush1.msra.mxu0 %v410_v26  ;;  %618 = vmatpush1.msra.mxu1 %v474_v27  ;;  %v507_v25 = vld [vmem:[#allocation8 + $0x3a8] sm:$0xff]  ;;  %v442_v26 = vld [vmem:[#allocation8 + $0x1a0] sm:$0xff] }
  0x85   :  { %542 = vmatprep.subr.mxu0 %v409_v28  ;;  %619 = vmatprep.subr.mxu1 %v473_v29  ;;  %v506_v27 = vld [vmem:[#allocation8 + $0x3a0] sm:$0xff]  ;;  %v441_v28 = vld [vmem:[#allocation8 + $0x198] sm:$0xff] }
  0x86   :  { %543 = vmatpush1.msra.mxu0 %v408_v30  ;;  %620 = vmatpush1.msra.mxu1 %v472_v31  ;;  %v505_v29 = vld [vmem:[#allocation8 + $0x398] sm:$0xff]  ;;  %v440_v30 = vld [vmem:[#allocation8 + $0x190] sm:$0xff] }
  0x87   :  { %544 = vmatprep.subr.mxu0 %v407_v32  ;;  %621 = vmatprep.subr.mxu1 %v471_v33  ;;  %v504_v31 = vld [vmem:[#allocation8 + $0x390] sm:$0xff]  ;;  %v439_v32 = vld [vmem:[#allocation8 + $0x188] sm:$0xff] }
  0x88   :  { %545 = vmatpush1.msra.mxu0 %v406_v34  ;;  %622 = vmatpush1.msra.mxu1 %v470_v35  ;;  %v503_v33 = vld [vmem:[#allocation8 + $0x388] sm:$0xff]  ;;  %v438_v34 = vld [vmem:[#allocation8 + $0x180] sm:$0xff] }
  0x89   :  { %546 = vmatprep.subr.mxu0 %v405_v36  ;;  %623 = vmatprep.subr.mxu1 %v469_v37  ;;  %v502_v35 = vld [vmem:[#allocation8 + $0x380] sm:$0xff]  ;;  %v437_v36 = vld [vmem:[#allocation8 + $0x178] sm:$0xff] }
  0x8a   :  { %547 = vmatpush1.msra.mxu0 %v404_v38  ;;  %624 = vmatpush1.msra.mxu1 %v468_v39  ;;  %v501_v37 = vld [vmem:[#allocation8 + $0x378] sm:$0xff]  ;;  %v436_v38 = vld [vmem:[#allocation8 + $0x170] sm:$0xff] }
  0x8b   :  { %548 = vmatprep.subr.mxu0 %v403_v40  ;;  %625 = vmatprep.subr.mxu1 %v467_v41  ;;  %v500_v39 = vld [vmem:[#allocation8 + $0x370] sm:$0xff]  ;;  %v435_v40 = vld [vmem:[#allocation8 + $0x168] sm:$0xff] }
  0x8c   :  { %549 = vmatpush1.msra.mxu0 %v402_v42  ;;  %626 = vmatpush1.msra.mxu1 %v466_v43  ;;  %v499_v41 = vld [vmem:[#allocation8 + $0x368] sm:$0xff]  ;;  %v434_v42 = vld [vmem:[#allocation8 + $0x160] sm:$0xff] }
  0x8d   :  { %550 = vmatprep.subr.mxu0 %v401_v44  ;;  %627 = vmatprep.subr.mxu1 %v465_v45  ;;  %v498_v43 = vld [vmem:[#allocation8 + $0x360] sm:$0xff]  ;;  %v433_v44 = vld [vmem:[#allocation8 + $0x158] sm:$0xff] }
  0x8e   :  { %551 = vmatpush1.msra.mxu0 %v400_v46  ;;  %628 = vmatpush1.msra.mxu1 %v464_v47  ;;  %v497_v45 = vld [vmem:[#allocation8 + $0x358] sm:$0xff]  ;;  %v432_v46 = vld [vmem:[#allocation8 + $0x150] sm:$0xff] }
  0x8f   :  { %552 = vmatprep.subr.mxu0 %v399_v48  ;;  %629 = vmatprep.subr.mxu1 %v463_v49  ;;  %v496_v47 = vld [vmem:[#allocation8 + $0x350] sm:$0xff]  ;;  %v431_v48 = vld [vmem:[#allocation8 + $0x148] sm:$0xff] }
  0x90   :  { %553 = vmatpush1.msra.mxu0 %v398_v50  ;;  %630 = vmatpush1.msra.mxu1 %v462_v51  ;;  %v495_v49 = vld [vmem:[#allocation8 + $0x348] sm:$0xff]  ;;  %v430_v50 = vld [vmem:[#allocation8 + $0x140] sm:$0xff] }
  0x91   :  { %554 = vmatprep.subr.mxu0 %v397_v52  ;;  %631 = vmatprep.subr.mxu1 %v461_v53  ;;  %v494_v51 = vld [vmem:[#allocation8 + $0x340] sm:$0xff]  ;;  %v429_v52 = vld [vmem:[#allocation8 + $0x138] sm:$0xff] }
  0x92   :  { %555 = vmatpush1.msra.mxu0 %v396_v54  ;;  %632 = vmatpush1.msra.mxu1 %v460_v55  ;;  %v493_v53 = vld [vmem:[#allocation8 + $0x338] sm:$0xff]  ;;  %v428_v54 = vld [vmem:[#allocation8 + $0x130] sm:$0xff] }
  0x93   :  { %556 = vmatprep.subr.mxu0 %v395_v56  ;;  %633 = vmatprep.subr.mxu1 %v459_v57  ;;  %v492_v55 = vld [vmem:[#allocation8 + $0x330] sm:$0xff]  ;;  %v427_v56 = vld [vmem:[#allocation8 + $0x128] sm:$0xff] }
  0x94   :  { %557 = vmatpush1.msra.mxu0 %v394_v58  ;;  %634 = vmatpush1.msra.mxu1 %v458_v59  ;;  %v491_v57 = vld [vmem:[#allocation8 + $0x328] sm:$0xff]  ;;  %v426_v58 = vld [vmem:[#allocation8 + $0x120] sm:$0xff] }
  0x95   :  { %558 = vmatprep.subr.mxu0 %v393_v60  ;;  %635 = vmatprep.subr.mxu1 %v457_v61  ;;  %v490_v59 = vld [vmem:[#allocation8 + $0x320] sm:$0xff]  ;;  %v425_v60 = vld [vmem:[#allocation8 + $0x118] sm:$0xff] }
  0x96   :  { %559 = vmatpush1.msra.mxu0 %v392_v62  ;;  %636 = vmatpush1.msra.mxu1 %v456_v63  ;;  %v489_v61 = vld [vmem:[#allocation8 + $0x318] sm:$0xff]  ;;  %v424_v62 = vld [vmem:[#allocation8 + $0x110] sm:$0xff] }
  0x97   :  { %560 = vmatprep.subr.mxu0 %v391_v0  ;;  %637 = vmatprep.subr.mxu1 %v455_v1  ;;  %v488_v63 = vld [vmem:[#allocation8 + $0x310] sm:$0xff]  ;;  %v423_v0 = vld [vmem:[#allocation8 + $0x108] sm:$0xff] }
  0x98   :  { %561 = vmatpush1.msra.mxu0 %v390_v2  ;;  %638 = vmatpush1.msra.mxu1 %v454_v3  ;;  %v487_v1 = vld [vmem:[#allocation8 + $0x308] sm:$0xff]  ;;  %v422_v2 = vld [vmem:[#allocation8 + $0x100] sm:$0xff] }
  0x99   :  { %562 = vmatprep.subr.mxu0 %v453_v4  ;;  %639 = vmatprep.subr.mxu1 %v517_v5  ;;  %v486_v3 = vld [vmem:[#allocation8 + $0x300] sm:$0xff]  ;;  %v208_v4 = vlaneseq }
  0x9a   :  { %563 = vmatpush2.msra.mxu0 %v452_v6  ;;  %640 = vmatpush2.msra.mxu1 %v516_v7 }
  0x9b   :  { %564 = vmatprep.subr.mxu0 %v451_v8  ;;  %641 = vmatprep.subr.mxu1 %v515_v9  ;;  %v209_v5 = vshrl.u32 %v208_v4, 7  ;;  %v206_v8 = vld [vmem:[#allocation7] sm:$0xf] }
  0x9c   :  { %565 = vmatpush2.msra.mxu0 %v450_v10  ;;  %642 = vmatpush2.msra.mxu1 %v514_v11 }
  0x9d   :  { %566 = vmatprep.subr.mxu0 %v449_v12  ;;  %643 = vmatprep.subr.mxu1 %v513_v13  ;;  %v218_v6 = vsub.s32 2, %v209_v5  ;;  %v210_v7 = vsub.s32 0, %v209_v5  ;;  %v214_v9 = vsub.s32 1, %v209_v5  ;;  %v222_v10 = vsub.s32 3, %v209_v5 }
  0x9e   :  { %567 = vmatpush2.msra.mxu0 %v448_v14  ;;  %644 = vmatpush2.msra.mxu1 %v512_v15 }
  0x9f   :  { %568 = vmatprep.subr.mxu0 %v447_v16  ;;  %645 = vmatprep.subr.mxu1 %v511_v17  ;;  %v219_v11 = vrot.slane %v206_v8, %v218_v6  ;;  %v211_v12 = vrot.slane %v206_v8, %v210_v7  ;;  %v215_v13 = vrot.slane %v206_v8, %v214_v9 }
  0xa0   :  { %569 = vmatpush2.msra.mxu0 %v446_v18  ;;  %646 = vmatpush2.msra.mxu1 %v510_v19  ;;  %v223_v14 = vrot.slane %v206_v8, %v222_v10 }
  0xa1   :  { %570 = vmatprep.subr.mxu0 %v445_v20  ;;  %647 = vmatprep.subr.mxu1 %v509_v21 }
  0xa2   :  { %571 = vmatpush2.msra.mxu0 %v444_v22  ;;  %648 = vmatpush2.msra.mxu1 %v508_v23 }
  0xa3   :  { %572 = vmatprep.subr.mxu0 %v443_v24  ;;  %649 = vmatprep.subr.mxu1 %v507_v25 }
  0xa4   :  { %573 = vmatpush2.msra.mxu0 %v442_v26  ;;  %650 = vmatpush2.msra.mxu1 %v506_v27 }
  0xa5   :  { %574 = vmatprep.subr.mxu0 %v441_v28  ;;  %651 = vmatprep.subr.mxu1 %v505_v29 }
  0xa6   :  { %575 = vmatpush2.msra.mxu0 %v440_v30  ;;  %652 = vmatpush2.msra.mxu1 %v504_v31 }
  0xa7   :  { %576 = vmatprep.subr.mxu0 %v439_v32  ;;  %653 = vmatprep.subr.mxu1 %v503_v33 }
  0xa8   :  { %577 = vmatpush2.msra.mxu0 %v438_v34  ;;  %654 = vmatpush2.msra.mxu1 %v502_v35 }
  0xa9   :  { %578 = vmatprep.subr.mxu0 %v437_v36  ;;  %655 = vmatprep.subr.mxu1 %v501_v37 }
  0xaa   :  { %579 = vmatpush2.msra.mxu0 %v436_v38  ;;  %656 = vmatpush2.msra.mxu1 %v500_v39  ;;  %v518_v39 = vld [vmem:[%s894_s4] sm:$0x3]  ;;  %s796_s4 = scalar_lea.vmem %s694_s16, 512 }
  0xab   :  { %580 = vmatprep.subr.mxu0 %v435_v40  ;;  %657 = vmatprep.subr.mxu1 %v499_v41  ;;  %v523_v40 = vrot.slane %v518_v39, %v210_v7  ;;  %v527_v41 = vrot.slane %v518_v39, %v214_v9  ;;  %p797_p6 = scmp.ne.s32.totalorder %s694_s16, %s796_s4  ;;  %p802_p8 = scmp.lt.s32.totalorder %s796_s4, %s796_s4 }
  0xac   :  { %581 = vmatpush2.msra.mxu0 %v434_v42  ;;  %658 = vmatpush2.msra.mxu1 %v498_v43 }
  0xad   :  { %582 = vmatprep.subr.mxu0 %v433_v44  ;;  %659 = vmatprep.subr.mxu1 %v497_v45  ;;  %p803_p9 = por %p802_p8, %p801_p7 }
  0xae   :  { %583 = vmatpush2.msra.mxu0 %v432_v46  ;;  %660 = vmatpush2.msra.mxu1 %v496_v47 }
  0xaf   :  { %584 = vmatprep.subr.mxu0 %v431_v48  ;;  %661 = vmatprep.subr.mxu1 %v495_v49  ;;  %p804_p10 = pnand %p803_p9, %p797_p6 }
  0xb0   :  { %585 = vmatpush2.msra.mxu0 %v430_v50  ;;  %662 = vmatpush2.msra.mxu1 %v494_v51 }
  0xb1   :  { %586 = vmatprep.subr.mxu0 %v429_v52  ;;  %663 = vmatprep.subr.mxu1 %v493_v53 }
  0xb2   :  { %587 = vmatpush2.msra.mxu0 %v428_v54  ;;  %664 = vmatpush2.msra.mxu1 %v492_v55 }
  0xb3   :  { %588 = vmatprep.subr.mxu0 %v427_v56  ;;  %665 = vmatprep.subr.mxu1 %v491_v57 }
  0xb4   :  { %589 = vmatpush2.msra.mxu0 %v426_v58  ;;  %666 = vmatpush2.msra.mxu1 %v490_v59 }
  0xb5   :  { %590 = vmatprep.subr.mxu0 %v425_v60  ;;  %667 = vmatprep.subr.mxu1 %v489_v61 }
  0xb6   :  { %591 = vmatpush2.msra.mxu0 %v424_v62  ;;  %668 = vmatpush2.msra.mxu1 %v488_v63 }
  0xb7   :  { %592 = vmatprep.subr.mxu0 %v423_v0  ;;  %669 = vmatprep.subr.mxu1 %v487_v1 }
  0xb8   :  { %593 = vmatpush2.msra.mxu0 %v422_v2  ;;  %670 = vmatpush2.msra.mxu1 %v486_v3 }
 0x136   :  { %v294_v15 = vpop.f32.mrf.mxu0  ;;  %v371_v16 = vpop.f32.mrf.mxu1 }
 0x137   :  { %v372_v17 = vadd.f32 %v371_v16, %v219_v11  ;;  %v295_v18 = vadd.f32 %v294_v15, %v211_v12 }
 0x138   :  { %v296_v19 = vpop.f32.mrf.mxu0  ;;  %v373_v20 = vpop.f32.mrf.mxu1 }
 0x139   :  { %v297_v21 = vadd.f32 %v296_v19, %v215_v13  ;;  %v374_v22 = vadd.f32 %v373_v20, %v223_v14  ;;  %v384_v23 = vmax.f32 %v372_v17, 0.0  ;;  %v382_v29 = vmax.f32 %v295_v18, 0.0 }
 0x13a   :  { %v300_v24 = vpop.f32.mrf.mxu0  ;;  %v377_v25 = vpop.f32.mrf.mxu1 }
 0x13b   :  { %v383_v26 = vmax.f32 %v297_v21, 0.0  ;;  %v385_v27 = vmax.f32 %v374_v22, 0.0  ;;  %v378_v28 = vadd.f32 %v377_v25, %v219_v11  ;;  %v301_v30 = vadd.f32 %v300_v24, %v211_v12 }
 0x13c   :  { %v302_v31 = vpop.f32.mrf.mxu0  ;;  %v379_v32 = vpop.f32.mrf.mxu1 }
 0x13d   :  { %v303_v33 = vadd.f32 %v302_v31, %v215_v13  ;;  %v380_v34 = vadd.f32 %v379_v32, %v223_v14  ;;  %594 = vmatprep.mubr.f32.mxu0 %v383_v26  ;;  %671 = vmatprep.mubr.f32.mxu1 %v385_v27  ;;  %v388_v35 = vmax.f32 %v378_v28, 0.0  ;;  %v386_v38 = vmax.f32 %v301_v30, 0.0 }
 0x13e   :  { %595 = vmatmul.mubr.f32.vlgmr.msra.gmra.mxu0 %v382_v29  ;;  %672 = vmatmul.mubr.f32.vlgmr.msra.gmra.mxu1 %v384_v23 }
 0x13f   :  { %v387_v36 = vmax.f32 %v303_v33, 0.0  ;;  %v389_v37 = vmax.f32 %v380_v34, 0.0 }
 0x141   :  { %600 = vmatprep.mubr.f32.mxu0 %v387_v36  ;;  %677 = vmatprep.mubr.f32.mxu1 %v389_v37 }
 0x142   :  { %601 = vmatmul.mubr.f32.gmra.mxu0 %v386_v38  ;;  %678 = vmatmul.mubr.f32.gmra.mxu1 %v388_v35 }
 0x1fe   :  { %v596_v42 = vpop.f32.mrf.mxu0  ;;  %v673_v43 = vpop.f32.mrf.mxu1 }
 0x1ff   :  { %v597_v44 = vadd.f32 %v596_v42, %v523_v40 }
 0x200   :  { %v598_v45 = vpop.f32.mrf.mxu0  ;;  %v675_v46 = vpop.f32.mrf.mxu1 }
 0x201   :  { %v674_v47 = vadd.f32 %v673_v43, %v597_v44  ;;  %v599_v48 = vadd.f32 %v598_v45, %v527_v41 }
 0x202   :  { %v602_v49 = vpop.f32.mrf.mxu0  ;;  %v679_v50 = vpop.f32.mrf.mxu1 }
 0x203   :  { %684 = vst [vmem:[#allocation10] sm:$0xff] %v674_v47  ;;  %v676_v51 = vadd.f32 %v675_v46, %v599_v48  ;;  %v603_v52 = vadd.f32 %v602_v49, %v523_v40 }
 0x204   :  { %v604_v53 = vpop.f32.mrf.mxu0  ;;  %v681_v56 = vpop.f32.mrf.mxu1 }
 0x205   :  { %685 = vst [vmem:[#allocation10 + $0x8] sm:$0xff] %v676_v51  ;;  %v680_v54 = vadd.f32 %v679_v50, %v603_v52  ;;  %v605_v55 = vadd.f32 %v604_v53, %v527_v41 }
 0x207   :  { %686 = vst [vmem:[#allocation10 + $0x10] sm:$0xff] %v680_v54  ;;  %v682_v57 = vadd.f32 %v681_v56, %v605_v55 }
 0x209   :  { %687 = vst [vmem:[#allocation10 + $0x18] sm:$0xff] %v682_v57 }
 0x20a   :  { %807 = shalt.err (!%p804_p10)
}
 0x20b   :  { %699 = dma.vmem_to_hbm [thread:$0]  %s694_s16, 512, %s895_s5, [#allocation4], %s828_s28, %s828_s28, %s829_s29  }
 0x20c   :  { %822 = dma.done.wait [#allocation4], 512  }
 0x20d   :  { %823 = vsyncadd [#allocation4], 4294966784 }
 0x20e   :  { %703 = vsyncpa [#allocation3], 1 }
 0x20f   :  { %704 = vsyncpa [#allocation6], 1 }
 0x210   :  { %705 = vsyncpa [#allocation9], 1 }
 0x211   :  { %706 = vsyncpa [#allocation4], 1 }

</bundles_post_ra>
